<compile_context>
chip_gen: v7x
topology: tpu7x:2x2x1
jax: 0.10.0
libtpu: 0.0.40
codegen_flags: <defaults>
</compile_context>

<pallas_src>
import functools

import jax
import jax.numpy as jnp
from jax import lax
from jax.experimental import pallas as pl
from jax.experimental.pallas import tpu as pltpu


def _round_up(x, m):
    return -(-x // m) * m


def _tile_partial(s_raw, t_raw, c_hat, *, base, tile_b, batch):
    """Masked partial sum over one batch tile of 1 - dot(s, c_hat)/max(|s|,|t|)."""
    s = s_raw.astype(jnp.float32)           # (TB, D)
    t = t_raw.astype(jnp.float32)           # (TB, D)
    c = c_hat.astype(jnp.float32)           # (TB, D), already unit-normalized

    s2 = jnp.sum(s * s, axis=-1, keepdims=True)        # (TB, 1)
    t2 = jnp.sum(t * t, axis=-1, keepdims=True)        # (TB, 1)
    dots = jnp.sum(s * c, axis=-1, keepdims=True)      # (TB, 1)

    per_sample = 1.0 - dots * lax.rsqrt(jnp.maximum(s2, t2))

    # Mask ragged-tail rows BEFORE the tile-level sum (garbage rows from the
    # partial last block; jnp.where does not propagate their NaN/Inf).
    row = lax.broadcasted_iota(jnp.int32, (tile_b, 1), 0)
    per_sample = jnp.where(base + row < batch, per_sample, 0.0)

    # Lane-dense per-tile partial (unmasked vst); wrapper reads column 0.
    return jnp.full((1, 128), jnp.sum(per_sample), dtype=jnp.float32)


def _nd_loss_gather_kernel(labels_ref, s_ref, t_ref, table_ref, o_ref,
                           centers_ref, *, batch, tile_b, num_class, unroll):
    """Resident-table path: labels in SMEM, per-row dynamic gather into VMEM scratch."""
    base = pl.program_id(0) * tile_b

    def gather_body(j, carry):
        lab = jnp.clip(labels_ref[base + j], 0, num_class - 1)
        centers_ref[pl.ds(j, 1), :] = table_ref[pl.ds(lab, 1), :].astype(jnp.float32)
        return carry

    # Partially unrolled so the scalar-load / dynamic-vld / vst chains overlap.
    lax.fori_loop(0, tile_b, gather_body, 0, unroll=unroll)

    o_ref[...] = _tile_partial(s_ref[...], t_ref[...], centers_ref[...],
                               base=base, tile_b=tile_b, batch=batch)


def _nd_loss_stream_kernel(s_ref, t_ref, c_ref, o_ref, *, batch, tile_b):
    """Fallback path (huge tables): centers pre-gathered in XLA and streamed."""
    base = pl.program_id(0) * tile_b
    o_ref[...] = _tile_partial(s_ref[...], t_ref[...], c_ref[...],
                               base=base, tile_b=tile_b, batch=batch)


def direct_norm_loss(s_emb, t_emb, t_emb_table, labels, nd_loss_factor=1.0,
                     tile_b=None):
    """Pallas implementation of DirectNormLoss.forward.

    s_emb, t_emb : [B, D] float (any float dtype; promoted to f32 in-kernel)
    t_emb_table  : [C, D] float  (dense replacement for the T_EMB dict)
    labels       : [B]    int
    """
    B, D = s_emb.shape
    C, Dt = t_emb_table.shape
    assert Dt == D and t_emb.shape == (B, D)
    assert s_emb.shape == t_emb.shape

    in_bytes = jnp.dtype(s_emb.dtype).itemsize
    # Sub-32-bit dtypes pack rows along sublanes: keep tiles a multiple of the
    # packed sublane count (8 rows f32, 16 rows bf16, 32 rows fp8/int8).
    mult = 8 if in_bytes >= 4 else (16 if in_bytes == 2 else 32)

    # ---- Pre-normalize the class-center table once (O(C*D)). ----------------
    # (Pass a bf16 table to halve its resident VMEM footprint if desired.)
    tab_f32 = t_emb_table.astype(jnp.float32)
    table_hat = (tab_f32 * lax.rsqrt(
        jnp.sum(tab_f32 * tab_f32, axis=-1, keepdims=True))
                 ).astype(t_emb_table.dtype)
    table_bytes = jnp.dtype(table_hat.dtype).itemsize
    table_vmem = C * D * table_bytes

    # ---- VMEM budget (v5e scoped default is 16 MiB; v7x has only 64 MiB). ---
    try:
        vmem_cap = int(getattr(pltpu.get_tpu_info(), "vmem_capacity_bytes",
                               64 << 20))
    except Exception:                       # pragma: no cover - conservative default
        vmem_cap = 64 << 20
    vmem_limit = int(max(32 << 20, min(vmem_cap - (16 << 20), 100 << 20)))

    # Resident table: single-buffer it when it is big (constant index_map).
    single_buffer_table = table_vmem > (2 << 20)
    table_buffers = 1 if single_buffer_table else 2
    resident_table = table_vmem * table_buffers <= vmem_limit // 2

    # ---- Derive tile_b from the remaining VMEM budget. ----------------------
    if resident_table:
        # s,t double-buffered tiles + f32 gathered-centers scratch.
        per_row = 2 * 2 * D * in_bytes + D * 4
        avail = vmem_limit - table_vmem * table_buffers - (2 << 20)
    else:
        # s,t + streamed centers, all double-buffered.
        per_row = 2 * 2 * D * in_bytes + 2 * D * table_bytes
        avail = vmem_limit - (2 << 20)
    cap = max(mult, avail // max(per_row, 1))

    if tile_b is None:
        if B <= mult:
            tile_b = B                       # block == full batch dim (allowed)
        else:
            tile_b = min(cap, 1024, _round_up(B, mult))
            tile_b = max(mult, (tile_b // mult) * mult)
            if tile_b >= B and B >= 2 * mult:
                # Keep >= 2 grid steps so megacore (v7x) can use both cores.
                tile_b = _round_up(-(-B // 2), mult)
    else:
        tile_b = max(1, min(int(tile_b), _round_up(B, mult)))

    num_tiles = -(-B // tile_b)
    padded_b = num_tiles * tile_b

    out_bytes = num_tiles * 128 * 4

    if resident_table:
        # Labels padded only (cheap): SMEM indexing base+j can reach padded_b-1.
        labels_i32 = labels.astype(jnp.int32).reshape(-1)
        if padded_b != B:
            labels_i32 = jnp.pad(labels_i32, (0, padded_b - B))

        if single_buffer_table:
            table_spec = pl.BlockSpec((C, D), lambda i, lab: (0, 0),
                                      pipeline_mode=pl.Buffered(1))
        else:
            table_spec = pl.BlockSpec((C, D), lambda i, lab: (0, 0))

        kernel = functools.partial(
            _nd_loss_gather_kernel, batch=B, tile_b=tile_b, num_class=C,
            unroll=int(min(tile_b, 8)))

        cost = pl.CostEstimate(
            flops=6 * B * D,
            transcendentals=B,
            bytes_accessed=int(2 * B * D * in_bytes + table_vmem
                               + padded_b * 4 + out_bytes))

        out = pl.pallas_call(
            kernel,
            out_shape=jax.ShapeDtypeStruct((num_tiles, 128), jnp.float32),
            grid_spec=pltpu.PrefetchScalarGridSpec(
                num_scalar_prefetch=1,                       # labels -> SMEM
                grid=(num_tiles,),
                in_specs=[
                    pl.BlockSpec((tile_b, D), lambda i, lab: (i, 0)),   # s tile
                    pl.BlockSpec((tile_b, D), lambda i, lab: (i, 0)),   # t tile
                    table_spec,                                         # resident table
                ],
                out_specs=pl.BlockSpec((1, 128), lambda i, lab: (i, 0)),
                scratch_shapes=[pltpu.VMEM((tile_b, D), jnp.float32)],  # centers
            ),
            compiler_params=pltpu.CompilerParams(
                dimension_semantics=("parallel",),
                vmem_limit_bytes=vmem_limit,
            ),
            cost_estimate=cost,
        )(labels_i32, s_emb, t_emb, table_hat)
    else:
        # Table too large for VMEM: gather the (already normalized) centers
        # once in XLA and stream them through the kernel.
        labels_c = jnp.clip(labels.astype(jnp.int32).reshape(-1), 0, C - 1)
        centers = jnp.take(table_hat, labels_c, axis=0)                 # (B, D)

        kernel = functools.partial(_nd_loss_stream_kernel, batch=B, tile_b=tile_b)

        cost = pl.CostEstimate(
            flops=6 * B * D,
            transcendentals=B,
            bytes_accessed=int(2 * B * D * in_bytes + B * D * table_bytes
                               + out_bytes))

        out = pl.pallas_call(
            kernel,
            out_shape=jax.ShapeDtypeStruct((num_tiles, 128), jnp.float32),
            grid=(num_tiles,),
            in_specs=[
                pl.BlockSpec((tile_b, D), lambda i: (i, 0)),   # s tile
                pl.BlockSpec((tile_b, D), lambda i: (i, 0)),   # t tile
                pl.BlockSpec((tile_b, D), lambda i: (i, 0)),   # centers tile
            ],
            out_specs=pl.BlockSpec((1, 128), lambda i: (i, 0)),
            compiler_params=pltpu.CompilerParams(
                dimension_semantics=("parallel",),
                vmem_limit_bytes=vmem_limit,
            ),
            cost_estimate=cost,
        )(s_emb, t_emb, centers)

    return jnp.sum(out[:, 0]) * (nd_loss_factor / B)


def _reference(s_emb, t_emb, t_emb_table, labels, nd_loss_factor=1.0):
    centers = jnp.take(t_emb_table, labels, axis=0)
    e_c = centers / jnp.linalg.norm(centers, axis=-1, keepdims=True)
    s_norm = jnp.linalg.norm(s_emb, axis=-1)
    t_norm = jnp.linalg.norm(t_emb, axis=-1)
    max_norm = jnp.maximum(s_norm, t_norm)
    dots = jnp.sum(s_emb * e_c, axis=-1)
    loss = jnp.sum(1.0 - dots / max_norm)
    return loss * nd_loss_factor / s_emb.shape[0]


if __name__ == "__main__":
    B, D, C = 8, 32, 16          # batch, embedding dim, num_class (small, synthetic)
    nd_loss_factor = 1.0

    key = jax.random.PRNGKey(0)
    k_s, k_t, k_tab, k_lab = jax.random.split(key, 4)
    s_emb = jax.random.normal(k_s, (B, D), dtype=jnp.float32)
    t_emb = jax.random.normal(k_t, (B, D), dtype=jnp.float32)
    # TODO(synk): the PyTorch module looks centers up in a Python dict keyed by
    # str(label); here it is a dense [num_class, D] array indexed by int label.
    t_emb_table = jax.random.normal(k_tab, (C, D), dtype=jnp.float32)
    labels = jax.random.randint(k_lab, (B,), 0, C, dtype=jnp.int32)

    loss = direct_norm_loss(s_emb, t_emb, t_emb_table, labels, nd_loss_factor)
    loss = jax.block_until_ready(loss)

    ref = _reference(s_emb, t_emb, t_emb_table, labels, nd_loss_factor)
    assert jnp.allclose(loss, ref, rtol=1e-4, atol=1e-4), (loss, ref)

    print("KERNEL_OK")
</pallas_src>

<mosaic_0001>
module attributes {stable_mosaic.version = 11 : i64} {
  func.func @_nd_loss_gather_kernel(%arg0: i32, %arg1: memref<8xi32, #tpu.memory_space<smem>>, %arg2: memref<8x32xf32, #tpu.memory_space<vmem>>, %arg3: memref<8x32xf32, #tpu.memory_space<vmem>>, %arg4: memref<16x32xf32, #tpu.memory_space<vmem>>, %arg5: memref<1x128xf32, #tpu.memory_space<vmem>>, %arg6: memref<8x32xf32, #tpu.memory_space<vmem>>) attributes {dimension_semantics = [#tpu.dimension_semantics<parallel>], iteration_bounds = array<i64: 1>, scalar_prefetch = 1 : i64, scratch_operands = 1 : i64, tpu.core_type = #tpu.core_type<tc>, window_params = [{transform_indices = @transform_0, window_bounds = array<i64: 8, 32>}, {transform_indices = @transform_1, window_bounds = array<i64: 8, 32>}, {pipeline_mode = #tpu.pipeline_mode<synchronous>, transform_indices = @transform_2, window_bounds = array<i64: 16, 32>}, {transform_indices = @transform_3, window_bounds = array<i64: 1, 128>}]} {
    %c8_i32 = arith.constant 8 : i32
    %0 = arith.muli %arg0, %c8_i32 : i32
    %c0_i32 = arith.constant 0 : i32
    %1 = arith.addi %0, %c0_i32 : i32
    %2 = arith.index_cast %1 : i32 to index
    %3 = memref.load %arg1[%2] : memref<8xi32, #tpu.memory_space<smem>>
    %c0_i32_0 = arith.constant 0 : i32
    %c15_i32 = arith.constant 15 : i32
    %4 = arith.maxsi %c0_i32_0, %3 : i32
    %5 = arith.minsi %c15_i32, %4 : i32
    %6 = arith.index_cast %5 : i32 to index
    %c0 = arith.constant 0 : index
    %7 = vector.load %arg4[%6, %c0] : memref<16x32xf32, #tpu.memory_space<vmem>>, vector<1x32xf32>
    %8 = arith.index_cast %c0_i32 : i32 to index
    %c0_1 = arith.constant 0 : index
    %9 = vector.load %arg6[%8, %c0_1] : memref<8x32xf32, #tpu.memory_space<vmem>>, vector<1x32xf32>
    tpu.vector_store %arg6[%8, %c0_1], %7 {strides = array<i32>} : memref<8x32xf32, #tpu.memory_space<vmem>>, vector<1x32xf32>,
    %c1_i32 = arith.constant 1 : i32
    %10 = arith.addi %0, %c1_i32 : i32
    %11 = arith.index_cast %10 : i32 to index
    %12 = memref.load %arg1[%11] : memref<8xi32, #tpu.memory_space<smem>>
    %c0_i32_2 = arith.constant 0 : i32
    %c15_i32_3 = arith.constant 15 : i32
    %13 = arith.maxsi %c0_i32_2, %12 : i32
    %14 = arith.minsi %c15_i32_3, %13 : i32
    %15 = arith.index_cast %14 : i32 to index
    %c0_4 = arith.constant 0 : index
    %16 = vector.load %arg4[%15, %c0_4] : memref<16x32xf32, #tpu.memory_space<vmem>>, vector<1x32xf32>
    %17 = arith.index_cast %c1_i32 : i32 to index
    %c0_5 = arith.constant 0 : index
    %18 = vector.load %arg6[%17, %c0_5] : memref<8x32xf32, #tpu.memory_space<vmem>>, vector<1x32xf32>
    tpu.vector_store %arg6[%17, %c0_5], %16 {strides = array<i32>} : memref<8x32xf32, #tpu.memory_space<vmem>>, vector<1x32xf32>,
    %c2_i32 = arith.constant 2 : i32
    %19 = arith.addi %0, %c2_i32 : i32
    %20 = arith.index_cast %19 : i32 to index
    %21 = memref.load %arg1[%20] : memref<8xi32, #tpu.memory_space<smem>>
    %c0_i32_6 = arith.constant 0 : i32
    %c15_i32_7 = arith.constant 15 : i32
    %22 = arith.maxsi %c0_i32_6, %21 : i32
    %23 = arith.minsi %c15_i32_7, %22 : i32
    %24 = arith.index_cast %23 : i32 to index
    %c0_8 = arith.constant 0 : index
    %25 = vector.load %arg4[%24, %c0_8] : memref<16x32xf32, #tpu.memory_space<vmem>>, vector<1x32xf32>
    %26 = arith.index_cast %c2_i32 : i32 to index
    %c0_9 = arith.constant 0 : index
    %27 = vector.load %arg6[%26, %c0_9] : memref<8x32xf32, #tpu.memory_space<vmem>>, vector<1x32xf32>
    tpu.vector_store %arg6[%26, %c0_9], %25 {strides = array<i32>} : memref<8x32xf32, #tpu.memory_space<vmem>>, vector<1x32xf32>,
    %c3_i32 = arith.constant 3 : i32
    %28 = arith.addi %0, %c3_i32 : i32
    %29 = arith.index_cast %28 : i32 to index
    %30 = memref.load %arg1[%29] : memref<8xi32, #tpu.memory_space<smem>>
    %c0_i32_10 = arith.constant 0 : i32
    %c15_i32_11 = arith.constant 15 : i32
    %31 = arith.maxsi %c0_i32_10, %30 : i32
    %32 = arith.minsi %c15_i32_11, %31 : i32
    %33 = arith.index_cast %32 : i32 to index
    %c0_12 = arith.constant 0 : index
    %34 = vector.load %arg4[%33, %c0_12] : memref<16x32xf32, #tpu.memory_space<vmem>>, vector<1x32xf32>
    %35 = arith.index_cast %c3_i32 : i32 to index
    %c0_13 = arith.constant 0 : index
    %36 = vector.load %arg6[%35, %c0_13] : memref<8x32xf32, #tpu.memory_space<vmem>>, vector<1x32xf32>
    tpu.vector_store %arg6[%35, %c0_13], %34 {strides = array<i32>} : memref<8x32xf32, #tpu.memory_space<vmem>>, vector<1x32xf32>,
    %c4_i32 = arith.constant 4 : i32
    %37 = arith.addi %0, %c4_i32 : i32
    %38 = arith.index_cast %37 : i32 to index
    %39 = memref.load %arg1[%38] : memref<8xi32, #tpu.memory_space<smem>>
    %c0_i32_14 = arith.constant 0 : i32
    %c15_i32_15 = arith.constant 15 : i32
    %40 = arith.maxsi %c0_i32_14, %39 : i32
    %41 = arith.minsi %c15_i32_15, %40 : i32
    %42 = arith.index_cast %41 : i32 to index
    %c0_16 = arith.constant 0 : index
    %43 = vector.load %arg4[%42, %c0_16] : memref<16x32xf32, #tpu.memory_space<vmem>>, vector<1x32xf32>
    %44 = arith.index_cast %c4_i32 : i32 to index
    %c0_17 = arith.constant 0 : index
    %45 = vector.load %arg6[%44, %c0_17] : memref<8x32xf32, #tpu.memory_space<vmem>>, vector<1x32xf32>
    tpu.vector_store %arg6[%44, %c0_17], %43 {strides = array<i32>} : memref<8x32xf32, #tpu.memory_space<vmem>>, vector<1x32xf32>,
    %c5_i32 = arith.constant 5 : i32
    %46 = arith.addi %0, %c5_i32 : i32
    %47 = arith.index_cast %46 : i32 to index
    %48 = memref.load %arg1[%47] : memref<8xi32, #tpu.memory_space<smem>>
    %c0_i32_18 = arith.constant 0 : i32
    %c15_i32_19 = arith.constant 15 : i32
    %49 = arith.maxsi %c0_i32_18, %48 : i32
    %50 = arith.minsi %c15_i32_19, %49 : i32
    %51 = arith.index_cast %50 : i32 to index
    %c0_20 = arith.constant 0 : index
    %52 = vector.load %arg4[%51, %c0_20] : memref<16x32xf32, #tpu.memory_space<vmem>>, vector<1x32xf32>
    %53 = arith.index_cast %c5_i32 : i32 to index
    %c0_21 = arith.constant 0 : index
    %54 = vector.load %arg6[%53, %c0_21] : memref<8x32xf32, #tpu.memory_space<vmem>>, vector<1x32xf32>
    tpu.vector_store %arg6[%53, %c0_21], %52 {strides = array<i32>} : memref<8x32xf32, #tpu.memory_space<vmem>>, vector<1x32xf32>,
    %c6_i32 = arith.constant 6 : i32
    %55 = arith.addi %0, %c6_i32 : i32
    %56 = arith.index_cast %55 : i32 to index
    %57 = memref.load %arg1[%56] : memref<8xi32, #tpu.memory_space<smem>>
    %c0_i32_22 = arith.constant 0 : i32
    %c15_i32_23 = arith.constant 15 : i32
    %58 = arith.maxsi %c0_i32_22, %57 : i32
    %59 = arith.minsi %c15_i32_23, %58 : i32
    %60 = arith.index_cast %59 : i32 to index
    %c0_24 = arith.constant 0 : index
    %61 = vector.load %arg4[%60, %c0_24] : memref<16x32xf32, #tpu.memory_space<vmem>>, vector<1x32xf32>
    %62 = arith.index_cast %c6_i32 : i32 to index
    %c0_25 = arith.constant 0 : index
    %63 = vector.load %arg6[%62, %c0_25] : memref<8x32xf32, #tpu.memory_space<vmem>>, vector<1x32xf32>
    tpu.vector_store %arg6[%62, %c0_25], %61 {strides = array<i32>} : memref<8x32xf32, #tpu.memory_space<vmem>>, vector<1x32xf32>,
    %c7_i32 = arith.constant 7 : i32
    %64 = arith.addi %0, %c7_i32 : i32
    %65 = arith.index_cast %64 : i32 to index
    %66 = memref.load %arg1[%65] : memref<8xi32, #tpu.memory_space<smem>>
    %c0_i32_26 = arith.constant 0 : i32
    %c15_i32_27 = arith.constant 15 : i32
    %67 = arith.maxsi %c0_i32_26, %66 : i32
    %68 = arith.minsi %c15_i32_27, %67 : i32
    %69 = arith.index_cast %68 : i32 to index
    %c0_28 = arith.constant 0 : index
    %70 = vector.load %arg4[%69, %c0_28] : memref<16x32xf32, #tpu.memory_space<vmem>>, vector<1x32xf32>
    %71 = arith.index_cast %c7_i32 : i32 to index
    %c0_29 = arith.constant 0 : index
    %72 = vector.load %arg6[%71, %c0_29] : memref<8x32xf32, #tpu.memory_space<vmem>>, vector<1x32xf32>
    tpu.vector_store %arg6[%71, %c0_29], %70 {strides = array<i32>} : memref<8x32xf32, #tpu.memory_space<vmem>>, vector<1x32xf32>,
    %c8_i32_30 = arith.constant 8 : i32
    %c0_31 = arith.constant 0 : index
    %c0_32 = arith.constant 0 : index
    %73 = vector.load %arg2[%c0_31, %c0_32] : memref<8x32xf32, #tpu.memory_space<vmem>>, vector<8x32xf32>
    %c0_33 = arith.constant 0 : index
    %c0_34 = arith.constant 0 : index
    %74 = vector.load %arg3[%c0_33, %c0_34] : memref<8x32xf32, #tpu.memory_space<vmem>>, vector<8x32xf32>
    %c0_35 = arith.constant 0 : index
    %c0_36 = arith.constant 0 : index
    %75 = vector.load %arg6[%c0_35, %c0_36] : memref<8x32xf32, #tpu.memory_space<vmem>>, vector<8x32xf32>
    %76 = arith.mulf %73, %73 : vector<8x32xf32>
    %cst = arith.constant dense<0.000000e+00> : vector<8xf32>
    %77 = vector.multi_reduction <add>, %76, %cst [1] : vector<8x32xf32> to vector<8xf32>
    %78 = vector.shape_cast %77 : vector<8xf32> to vector<8x1xf32>
    %79 = arith.mulf %74, %74 : vector<8x32xf32>
    %cst_37 = arith.constant dense<0.000000e+00> : vector<8xf32>
    %80 = vector.multi_reduction <add>, %79, %cst_37 [1] : vector<8x32xf32> to vector<8xf32>
    %81 = vector.shape_cast %80 : vector<8xf32> to vector<8x1xf32>
    %82 = arith.mulf %73, %75 : vector<8x32xf32>
    %cst_38 = arith.constant dense<0.000000e+00> : vector<8xf32>
    %83 = vector.multi_reduction <add>, %82, %cst_38 [1] : vector<8x32xf32> to vector<8xf32>
    %84 = vector.shape_cast %83 : vector<8xf32> to vector<8x1xf32>
    %85 = arith.maximumf %78, %81 : vector<8x1xf32>
    %86 = math.rsqrt %85 : vector<8x1xf32>
    %87 = arith.mulf %84, %86 : vector<8x1xf32>
    %cst_39 = arith.constant 1.000000e+00 : f32
    %88 = vector.broadcast %cst_39 : f32 to vector<8x1xf32>
    %89 = arith.subf %88, %87 : vector<8x1xf32>
    %90 = tpu.iota {dimensions = array<i32: 0>} : vector<8x1xi32>
    %91 = vector.broadcast %0 : i32 to vector<8x1xi32>
    %92 = arith.addi %91, %90 : vector<8x1xi32>
    %c8_i32_40 = arith.constant 8 : i32
    %93 = vector.broadcast %c8_i32_40 : i32 to vector<8x1xi32>
    %94 = arith.cmpi slt, %92, %93 : vector<8x1xi32>
    %cst_41 = arith.constant 0.000000e+00 : f32
    %95 = vector.broadcast %cst_41 : f32 to vector<8x1xf32>
    %96 = arith.select %94, %89, %95 : vector<8x1xi1>, vector<8x1xf32>
    %97 = vector.shape_cast %96 : vector<8x1xf32> to vector<1x8x1xf32>
    %cst_42 = arith.constant dense<0.000000e+00> : vector<1xf32>
    %98 = vector.multi_reduction <add>, %97, %cst_42 [1, 2] : vector<1x8x1xf32> to vector<1xf32>
    %99 = vector.shape_cast %98 : vector<1xf32> to vector<1x1x1xf32>
    %100 = vector.extract %99[0, 0, 0] : f32 from vector<1x1x1xf32>
    %101 = vector.broadcast %100 : f32 to vector<1x128xf32>
    %c0_43 = arith.constant 0 : index
    %c0_44 = arith.constant 0 : index
    %102 = vector.load %arg5[%c0_43, %c0_44] : memref<1x128xf32, #tpu.memory_space<vmem>>, vector<1x128xf32>
    tpu.vector_store %arg5[%c0_43, %c0_44], %101 {strides = array<i32>} : memref<1x128xf32, #tpu.memory_space<vmem>>, vector<1x128xf32>,
    return
  }
  func.func @transform_0(%arg0: i32, %arg1: memref<8xi32, #tpu.memory_space<smem>>) -> (i32, i32) {
    %c0_i32 = arith.constant 0 : i32
    %c0_i32_0 = arith.constant 0 : i32
    return %arg0, %c0_i32 : i32, i32
  }
  func.func @transform_1(%arg0: i32, %arg1: memref<8xi32, #tpu.memory_space<smem>>) -> (i32, i32) {
    %c0_i32 = arith.constant 0 : i32
    %c0_i32_0 = arith.constant 0 : i32
    return %arg0, %c0_i32 : i32, i32
  }
  func.func @transform_2(%arg0: i32, %arg1: memref<8xi32, #tpu.memory_space<smem>>) -> (i32, i32) {
    %c0_i32 = arith.constant 0 : i32
    %c0_i32_0 = arith.constant 0 : i32
    %c0_i32_1 = arith.constant 0 : i32
    return %c0_i32, %c0_i32_0 : i32, i32
  }
  func.func @transform_3(%arg0: i32, %arg1: memref<8xi32, #tpu.memory_space<smem>>) -> (i32, i32) {
    %c0_i32 = arith.constant 0 : i32
    %c0_i32_0 = arith.constant 0 : i32
    return %arg0, %c0_i32 : i32, i32
  }
}

</mosaic_0001>

<bundles_post_ra>
// kernel: tpu_custom_call.1
= control target key start
LH: loop header
LB: loop body
LE: loop exit
PB: predicated region body
PF: predicated region fallthrough
CT: control target
= control target key end

     0   :  { %s511_s0 = inlined_call_operand.hbm [shape: s32[8], index: 0, kind: input, shape index: {}]   ;;  %s512_s1 = inlined_call_operand.hbm [shape: f32[8,32], index: 1, kind: input, shape index: {}]   ;;  %s513_s2 = inlined_call_operand.hbm [shape: f32[8,32], index: 2, kind: input, shape index: {}]   ;;  %s514_s3 = inlined_call_operand.hbm [shape: f32[16,32], index: 3, kind: input, shape index: {}]   ;;  %s515_s4 = inlined_call_operand.hbm [shape: f32[1,128], index: 4, kind: output, shape index: {}]  }
   0x1   :  { %s267_s17 = scalar_lea.hbm %s511_s0, 16 }
   0x2   :  { %p268_p0 = scmp.ne.s32.totalorder %s511_s0, %s267_s17  ;;  %p271_p1 = scmp.lt.u32.totalorder %s267_s17, %s511_s0 }
   0x4   :  { %p273_p2 = pnand %p271_p1, %p268_p0 }
   0x6   :  { %276 = shalt.err (!%p273_p2)  }
   0x7   :  { %s373_s22 = smov [#allocation4]  }
   0x8   :  { %10 = dma.hbm_to_smem %s511_s0, 16, %s373_s22, [#allocation3] }
   0x9   :  { %365 = dma.done.wait [#allocation3], 16 }
   0xa   :  { %366 = vsyncadd [#allocation3], 4294967280 }
   0xb   :  { %12 = sfence }
   0xc   :  { %13 = vsyncpa [#allocation6], 0 }
   0xd   :  { %14 = vsyncpa [#allocation9], 0 }
   0xe   :  { %15 = vsyncpa [#allocation7], 0  ;;  %s374_s25 = smov [#allocation8]   ;;  %s375_s27 = smov [#allocation5]  }
   0xf   :  { %s32_s26 = sshll.u32 %s374_s25, 4  ;;  %s22_s28 = sshll.u32 %s375_s27, 4  ;;  %s33_s26 = int_to_ptr.vmem [resolvable:$true] %s32_s26  ;;  %s23_s28 = int_to_ptr.vmem [resolvable:$true] %s22_s28 }
  0x10   :  { %s277_s5 = scalar_lea.hbm %s513_s2, 128 }
  0x11   :  { %p278_p3 = scmp.ne.s32.totalorder %s513_s2, %s277_s5  ;;  %p281_p4 = scmp.lt.u32.totalorder %s277_s5, %s513_s2 }
  0x13   :  { %p283_p5 = pnand %p281_p4, %p278_p3 }
  0x15   :  { %286 = shalt.err (!%p283_p5)
}
  0x16   :  { %s287_s9 = scalar_lea.vmem %s33_s26, 128  ;;  %p292_p7 = scmp.lt.s32.totalorder %s33_s26, %s33_s26 }
  0x17   :  { %p288_p6 = scmp.ne.s32.totalorder %s33_s26, %s287_s9  ;;  %p293_p8 = scmp.lt.s32.totalorder %s287_s9, %s287_s9 }
  0x19   :  { %p294_p9 = por %p293_p8, %p292_p7 }
  0x1b   :  { %p295_p10 = pnand %p294_p9, %p288_p6 }
  0x1d   :  { %298 = shalt.err (!%p295_p10)
}
  0x1e   :  { %35 = dma.hbm_to_vmem [thread:$0]  %s513_s2, 128, %s33_s26, [#allocation9]  }
  0x1f   :  { %s299_s14 = scalar_lea.hbm %s512_s1, 128 }
  0x20   :  { %p300_p11 = scmp.ne.s32.totalorder %s512_s1, %s299_s14  ;;  %p303_p12 = scmp.lt.u32.totalorder %s299_s14, %s512_s1 }
  0x22   :  { %p305_p13 = pnand %p303_p12, %p300_p11 }
  0x24   :  { %308 = shalt.err (!%p305_p13)
}
  0x25   :  { %s309_s19 = scalar_lea.vmem %s23_s28, 128  ;;  %p314_p1 = scmp.lt.s32.totalorder %s23_s28, %s23_s28 }
  0x26   :  { %p310_p0 = scmp.ne.s32.totalorder %s23_s28, %s309_s19  ;;  %p315_p2 = scmp.lt.s32.totalorder %s309_s19, %s309_s19 }
  0x28   :  { %p316_p3 = por %p315_p2, %p314_p1 }
  0x2a   :  { %p317_p4 = pnand %p316_p3, %p310_p0 }
  0x2c   :  { %320 = shalt.err (!%p317_p4)
}
  0x2d   :  { %25 = dma.hbm_to_vmem [thread:$0]  %s512_s1, 128, %s23_s28, [#allocation6]  }
  0x2e   :  { %s376_s21 = smov [#allocation10]   ;;  %s321_s25 = scalar_lea.hbm %s514_s3, 256 }
  0x2f   :  { %s41_s22 = sshll.u32 %s376_s21, 4  ;;  %p322_p5 = scmp.ne.s32.totalorder %s514_s3, %s321_s25  ;;  %s42_s22 = int_to_ptr.vmem [resolvable:$true] %s41_s22 }
  0x30   :  { %p325_p6 = scmp.lt.u32.totalorder %s321_s25, %s514_s3 }
  0x32   :  { %p327_p7 = pnand %p325_p6, %p322_p5 }
  0x34   :  { %330 = shalt.err (!%p327_p7)
}
  0x35   :  { %s331_s5 = scalar_lea.vmem %s42_s22, 256  ;;  %p336_p9 = scmp.lt.s32.totalorder %s42_s22, %s42_s22 }
  0x36   :  { %p332_p8 = scmp.ne.s32.totalorder %s42_s22, %s331_s5  ;;  %p337_p10 = scmp.lt.s32.totalorder %s331_s5, %s331_s5 }
  0x38   :  { %p338_p11 = por %p337_p10, %p336_p9 }
  0x3a   :  { %p339_p12 = pnand %p338_p11, %p332_p8 }
  0x3c   :  { %342 = shalt.err (!%p339_p12)
}
  0x3d   :  { %s377_s1 = smov 128   ;;  %s378_s28 = smov 8  }
  0x3e   :  { %47 = dma.hbm_to_vmem [thread:$0]  %s514_s3, 256, %s42_s22, [#allocation9], %s377_s1, %s377_s1, %s378_s28  }
  0x3f   :  { %367 = dma.done.wait [#allocation6], 128  }
  0x40   :  { %368 = vsyncadd [#allocation6], 4294967168 }
  0x41   :  { %369 = dma.done.wait [#allocation9], 384  }
  0x42   :  { %370 = vsyncadd [#allocation9], 4294966912  ;;  %s58_s0 = sld [smem:[#allocation4]]  ;;  %s198_s8 = sld [smem:[#allocation4 + $0x1]]  ;;  %v465_v0 = vld [vmem:[#allocation5] sm:$0xff]  ;;  %vm134_vm0 = vcmask 261120  }
  0x43   :  { %s453_s9 = sld [smem:[#allocation4 + $0x2]]  ;;  %s455_s10 = sld [smem:[#allocation4 + $0x3]]  ;;  %v131_v1 = vld [vmem:[#allocation8] sm:$0xff]  ;;  %v133_v2 = vmul.f32 %v465_v0, %v465_v0  ;;  %vm65_vm1 = vcmask 253952   ;;  %vm156_vm2 = vcmask 7168  }
  0x44   :  { %s457_s11 = sld [smem:[#allocation4 + $0x4]]  ;;  %s459_s12 = sld [smem:[#allocation4 + $0x5]]  ;;  %v138_v3 = vmul.f32 %v131_v1, %v131_v1 }
  0x45   :  { %s461_s13 = sld [smem:[#allocation4 + $0x6]]  ;;  %s463_s14 = sld [smem:[#allocation4 + $0x7]]  ;;  %v135_v4 = vsel %vm134_vm0, %v133_v2, 0.0 }
  0x46   :  { %136 = vadd.xlane.f32.xlu0 %v135_v4  ;;  %v139_v5 = vsel %vm134_vm0, %v138_v3, 0.0  ;;  %s379_s23 = smov [#allocation11]  }
  0x47   :  { %s175_s24 = sshll.u32 %s379_s23, 4  ;;  %s176_s24 = int_to_ptr.vmem [resolvable:$true] %s175_s24 }
  0x48   :  { %p59_p13 = scmp.gt.s32.totalorder %s58_s0, 0  ;;  %p193_p0 = scmp.lt.s32.totalorder %s58_s0, 15 }
  0x49   :  { %p69_p1 = scmp.gt.s32.totalorder %s198_s8, 0  ;;  %p199_p2 = scmp.lt.s32.totalorder %s198_s8, 15 }
  0x4a   :  { %s517_s0 = smov (!%p59_p13, %s58_s0), 0  ;;  %p78_p3 = scmp.gt.s32.totalorder %s453_s9, 0  ;;  %140 = vadd.xlane.f32.xlu0 %v139_v5 }
  0x4b   :  { %s519_s8 = smov (!%p69_p1, %s198_s8), 0  ;;  %s521_s0 = smov (!%p193_p0, %s517_s0), 15 }
  0x4c   :  { %s523_s8 = smov (!%p199_p2, %s519_s8), 15  ;;  %s63_s3 = scalar_lea.vmem [#allocation10], %s521_s0 }
  0x4d   :  { %v64_v6 = vld [vmem:[%s63_s3] sm:$0x1]  ;;  %p205_p4 = scmp.lt.s32.totalorder %s453_s9, 15  ;;  %s73_s15 = scalar_lea.vmem [#allocation10], %s523_s8 }
  0x4e   :  { %66 = vst.msk [vmem:[#allocation2] sm:$0x1] %vm65_vm1, %v64_v6  ;;  %v74_v7 = vld [vmem:[%s73_s15] sm:$0x1]  ;;  %s525_s9 = smov (!%p78_p3, %s453_s9), 0  ;;  %p87_p5 = scmp.gt.s32.totalorder %s455_s10, 0 }
  0x4f   :  { %75 = vst.msk [vmem:[#allocation2 + $0x1] sm:$0x1] %vm65_vm1, %v74_v7  ;;  %p211_p6 = scmp.lt.s32.totalorder %s455_s10, 15  ;;  %s527_s9 = smov (!%p205_p4, %s525_s9), 15 }
  0x50   :  { %s529_s10 = smov (!%p87_p5, %s455_s10), 0  ;;  %p96_p7 = scmp.gt.s32.totalorder %s457_s11, 0 }
  0x51   :  { %s82_s16 = scalar_lea.vmem [#allocation10], %s527_s9  ;;  %s531_s10 = smov (!%p211_p6, %s529_s10), 15 }
  0x52   :  { %v83_v8 = vld [vmem:[%s82_s16] sm:$0x1]  ;;  %s97_s17 = scalar_select %p96_p7, %s457_s11, 0 }
  0x53   :  { %84 = vst.msk [vmem:[#allocation2 + $0x2] sm:$0x1] %vm65_vm1, %v83_v8  ;;  %p217_p8 = scmp.lt.s32.totalorder %s457_s11, 15  ;;  %s91_s18 = scalar_lea.vmem [#allocation10], %s531_s10 }
  0x54   :  { %v92_v9 = vld [vmem:[%s91_s18] sm:$0x1]  ;;  %p105_p9 = scmp.gt.s32.totalorder %s459_s12, 0  ;;  %p223_p10 = scmp.lt.s32.totalorder %s459_s12, 15 }
  0x55   :  { %93 = vst.msk [vmem:[#allocation2 + $0x3] sm:$0x1] %vm65_vm1, %v92_v9  ;;  %s533_s17 = smov (!%p217_p8, %s97_s17), 15  ;;  %p114_p11 = scmp.gt.s32.totalorder %s461_s13, 0 }
  0x56   :  { %s535_s12 = smov (!%p105_p9, %s459_s12), 0  ;;  %s100_s19 = scalar_lea.vmem [#allocation10], %s533_s17 }
  0x57   :  { %v101_v10 = vld [vmem:[%s100_s19] sm:$0x1]  ;;  %s537_s12 = smov (!%p223_p10, %s535_s12), 15  ;;  %p229_p12 = scmp.lt.s32.totalorder %s461_s13, 15 }
  0x58   :  { %102 = vst.msk [vmem:[#allocation2 + $0x4] sm:$0x1] %vm65_vm1, %v101_v10  ;;  %s115_s2 = scalar_select %p114_p11, %s461_s13, 0 }
  0x59   :  { %s109_s20 = scalar_lea.vmem [#allocation10], %s537_s12  ;;  %p123_p13 = scmp.gt.s32.totalorder %s463_s14, 0 }
  0x5a   :  { %v110_v11 = vld [vmem:[%s109_s20] sm:$0x1]  ;;  %p235_p0 = scmp.lt.s32.totalorder %s463_s14, 15  ;;  %s539_s2 = smov (!%p229_p12, %s115_s2), 15 }
  0x5b   :  { %111 = vst.msk [vmem:[#allocation2 + $0x5] sm:$0x1] %vm65_vm1, %v110_v11  ;;  %s541_s14 = smov (!%p123_p13, %s463_s14), 0  ;;  %s118_s21 = scalar_lea.vmem [#allocation10], %s539_s2 }
  0x5c   :  { %v119_v12 = vld [vmem:[%s118_s21] sm:$0x1]  ;;  %s543_s14 = smov (!%p235_p0, %s541_s14), 15  ;;  %s343_s26 = scalar_lea.vmem %s176_s24, 16 }
  0x5d   :  { %120 = vst.msk [vmem:[#allocation2 + $0x6] sm:$0x1] %vm65_vm1, %v119_v12  ;;  %s127_s22 = scalar_lea.vmem [#allocation10], %s543_s14  ;;  %p344_p1 = scmp.ne.s32.totalorder %s176_s24, %s343_s26 }
  0x5e   :  { %v128_v13 = vld [vmem:[%s127_s22] sm:$0x1]  ;;  %s347_s27 = scalar_lea.vmem %s176_s24, 32  ;;  %p348_p2 = scmp.lt.s32.totalorder %s176_s24, %s176_s24 }
  0x5f   :  { %129 = vst.msk [vmem:[#allocation2 + $0x7] sm:$0x1] %vm65_vm1, %v128_v13  ;;  %p349_p3 = scmp.lt.s32.totalorder %s347_s27, %s343_s26 }
  0x61   :  { %p350_p4 = por %p349_p3, %p348_p2 }
  0x63   :  { %p351_p5 = pnand %p350_p4, %p344_p1 }
  0x66   :  { %v132_v14 = vld [vmem:[#allocation2] sm:$0xff] }
  0x67   :  { %v142_v15 = vmul.f32 %v132_v14, %v465_v0 }
  0x69   :  { %v143_v16 = vsel %vm134_vm0, %v142_v15, 0.0 }
  0x6a   :  { %144 = vadd.xlane.f32.xlu1 %v143_v16 }
  0xd3   :  { %v137_v17 = vpop.xlane.xlu0 %136 }
  0xd7   :  { %v141_v18 = vpop.xlane.xlu0 %140 }
  0xd8   :  { %v146_v19 = vmax.f32 %v137_v17, %v141_v18 }
  0xda   :  { %265 = vrsqrt.f32 %v146_v19 }
  0xe4   :  { %v266_v20 = vpop.eup %265 }
  0xf7   :  { %v145_v21 = vpop.xlane.xlu1 %144 }
  0xf8   :  { %v148_v22 = vmul.f32 %v266_v20, %v145_v21 }
  0xfa   :  { %v149_v23 = vsub.f32 1.0, %v148_v22 }
  0xfc   :  { %v157_v24 = vsel %vm156_vm2, %v149_v23, 0.0 }
  0xfd   :  { %158 = vadd.xlane.f32.xlu1 %v157_v24 }
 0x18a   :  { %v159_v25 = vpop.xlane.xlu1 %158 }
 0x18b   :  { %v160_v26 = vrot.slane %v159_v25, 4 }
 0x18d   :  { %v161_v27 = vadd.f32 %v160_v26, %v159_v25 }
 0x18f   :  { %v162_v28 = vrot.slane %v161_v27, 2 }
 0x191   :  { %v163_v29 = vadd.f32 %v162_v28, %v161_v27 }
 0x193   :  { %v164_v30 = vrot.slane %v163_v29, 1 }
 0x195   :  { %v165_v31 = vadd.f32 %v164_v30, %v163_v29 }
 0x197   :  { %256 = vpush %v165_v31 }
 0x1c8   :  { %s257_s25 = spop %256 }
 0x1c9   :  { %v167_v32 = vstv %s257_s25 }
 0x1ca   :  { %168 = vst [vmem:[#allocation11] sm:$0x1] %v167_v32 }
 0x1cb   :  { %354 = shalt.err (!%p351_p5)
}
 0x1cc   :  { %s355_s5 = scalar_lea.hbm %s515_s4, 16 }
 0x1cd   :  { %p356_p6 = scmp.ne.s32.totalorder %s515_s4, %s355_s5  ;;  %p359_p7 = scmp.lt.u32.totalorder %s355_s5, %s515_s4 }
 0x1cf   :  { %p361_p8 = pnand %p359_p7, %p356_p6 }
 0x1d1   :  { %364 = shalt.err (!%p361_p8)
}
 0x1d2   :  { %178 = dma.vmem_to_hbm [thread:$0]  %s176_s24, 16, %s515_s4, [#allocation7]  }
 0x1d3   :  { %371 = dma.done.wait [#allocation7], 16  }
 0x1d4   :  { %372 = vsyncadd [#allocation7], 4294967280 }
 0x1d5   :  { %182 = vsyncpa [#allocation6], 1 }
 0x1d6   :  { %183 = vsyncpa [#allocation9], 1 }
 0x1d7   :  { %184 = vsyncpa [#allocation7], 1 }

</bundles_post_ra>
